<compile_context>
chip_gen: v7x
topology: tpu7x:2x2x1
jax: 0.10.0
libtpu: 0.0.40
codegen_flags: <defaults>
</compile_context>

<pallas_src>
import functools

import jax
import jax.numpy as jnp
from jax.experimental import pallas as pl
from jax.experimental.pallas import tpu as pltpu


def _round_up(x: int, m: int) -> int:
    return (x + m - 1) // m * m


# Conservative VMEM budget that fits every generation (v7x has 64 MiB / TC).
_VMEM_BUDGET = 36 * 1024 * 1024


def _vmem_bytes(tb, d_in, x_itemsize, w_itemsize, h1_p, h2_p):
    x_tiles = 2 * tb * d_in * x_itemsize                 # double-buffered x tiles
    out_tiles = 2 * tb * 4                               # double-buffered (1, tb) f32 out
    weights = 2 * ((d_in * h1_p + h1_p * h2_p + h2_p) * w_itemsize
                   + (h1_p + 2 * h2_p) * 4)              # resident weights / biases (2 bufs)
    temps = 6 * tb * max(h1_p, h2_p) * 4                 # f32 intermediates (z1,h1,z2,h2,...)
    return x_tiles + out_tiles + weights + temps


def _mlp_kernel(x_ref, w1_ref, b1_ref, w2_ref, b2_ref, w3t_ref, b3_ref, o_ref):
    # One batch tile, all three layers fused.  Native dtypes go straight to
    # the MXU; accumulation is f32 via preferred_element_type.
    x = x_ref[...]

    z1 = jnp.dot(x, w1_ref[...], preferred_element_type=jnp.float32) + b1_ref[...]
    h1 = jnp.maximum(z1, 0.0)

    z2 = jnp.dot(h1, w2_ref[...], preferred_element_type=jnp.float32) + b2_ref[...]
    h2 = jnp.maximum(z2, 0.0)

    # fc3 (single output unit) computed transposed: (1, h2_p) x (h2_p, tb)
    # -> (1, tb), so the store is one dense lane row instead of a
    # 128x-padded (tb, 128) block.  b3 is a scalar read from SMEM.
    z3 = jnp.dot(w3t_ref[...], h2.T, preferred_element_type=jnp.float32) + b3_ref[0, 0]
    o_ref[...] = jax.nn.sigmoid(z3).astype(o_ref.dtype)


@functools.partial(jax.jit, static_argnames=("max_tile_b",))
def medium_mlp_forward(x, w1, b1, w2, b2, w3, b3, *, max_tile_b: int = 1024):
    """Pallas implementation of mediumMLP.forward(x) -> (B, 1) probabilities.

    Weights are stored (in_features, out_features); equivalent to PyTorch's
    x @ W.T + b with W of shape (out, in).
    """
    B = x.shape[0]
    x2 = x.reshape(B, -1)                       # torch.reshape(x, (B, -1))
    d_in = x2.shape[1]
    h1 = w1.shape[1]                            # 108
    h2 = w2.shape[1]                            # 36

    # Lane-padded hidden widths (weights only — they are tiny).
    h1_p = _round_up(h1, 128)
    h2_p = _round_up(h2, 128)

    x_itemsize = jnp.dtype(x2.dtype).itemsize
    w_itemsize = jnp.dtype(w1.dtype).itemsize

    # ---- batch tile selection -------------------------------------------
    # Start from the largest allowed tile and shrink until it fits the VMEM
    # budget (stays a multiple of 128 while tiling).
    tb = max(128, (max_tile_b // 128) * 128)
    while tb > 128 and _vmem_bytes(tb, d_in, x_itemsize, w_itemsize, h1_p, h2_p) > _VMEM_BUDGET:
        tb //= 2

    if B >= 256:
        # keep at least two grid steps (megacore split on multi-TC parts)
        # without dropping below 128-row tiles
        tb = min(tb, max(128, (B // 2) // 128 * 128))
    else:
        tb = _round_up(B, 8)                    # one tile covers the whole batch

    b_p = _round_up(B, tb)
    grid = (b_p // tb,)

    # ---- operand prep -----------------------------------------------------
    # x keeps its native feature width (no wrapper-side lane padding, hence no
    # extra HBM round-trip of the big input).  Batch rows are padded only when
    # B % tb != 0.  Weights/biases are tiny: pad freely, zeros are exact no-ops.
    x_p = x2 if b_p == B else jnp.pad(x2, ((0, b_p - B), (0, 0)))
    w1_p = jnp.pad(w1, ((0, 0), (0, h1_p - h1)))
    w2_p = jnp.pad(w2, ((0, h1_p - w2.shape[0]), (0, h2_p - h2)))
    w3t_p = jnp.pad(w3.T, ((0, 0), (0, h2_p - w3.shape[0])))           # (1, h2_p)
    b1_p = jnp.pad(b1.reshape(1, -1).astype(jnp.float32), ((0, 0), (0, h1_p - h1)))
    b2_p = jnp.pad(b2.reshape(1, -1).astype(jnp.float32), ((0, 0), (0, h2_p - h2)))
    b3_s = b3.reshape(1, 1).astype(jnp.float32)                        # SMEM scalar

    need = _vmem_bytes(tb, d_in, x_itemsize, w_itemsize, h1_p, h2_p)
    vmem_limit = int(min(48 * 1024 * 1024, max(24 * 1024 * 1024, need + 8 * 1024 * 1024)))

    out = pl.pallas_call(
        _mlp_kernel,
        out_shape=jax.ShapeDtypeStruct((1, b_p), jnp.float32),
        grid_spec=pltpu.PrefetchScalarGridSpec(
            num_scalar_prefetch=0,
            grid=grid,
            in_specs=[
                pl.BlockSpec((tb, d_in), lambda i: (i, 0)),        # x tile (pipelined)
                pl.BlockSpec((d_in, h1_p), lambda i: (0, 0)),      # W1 (resident)
                pl.BlockSpec((1, h1_p), lambda i: (0, 0)),         # b1
                pl.BlockSpec((h1_p, h2_p), lambda i: (0, 0)),      # W2
                pl.BlockSpec((1, h2_p), lambda i: (0, 0)),         # b2
                pl.BlockSpec((1, h2_p), lambda i: (0, 0)),         # W3^T row
                pl.BlockSpec(memory_space=pltpu.MemorySpace.SMEM), # b3 scalar
            ],
            # Transposed, lane-dense output: one 4-byte value per batch row.
            out_specs=pl.BlockSpec((1, tb), lambda i: (0, i)),
        ),
        compiler_params=pltpu.CompilerParams(
            dimension_semantics=("parallel",),      # batch tiles are independent
            vmem_limit_bytes=vmem_limit,            # derived from tile size
        ),
    )(x_p, w1_p, b1_p, w2_p, b2_p, w3t_p, b3_s)

    # (1, b_p) -> (B, 1), dropping batch padding; matches the PyTorch output.
    return out[0, :B].reshape(B, 1)


def _init_linear(key, fan_in, fan_out):
    # PyTorch nn.Linear default init: U(-1/sqrt(fan_in), 1/sqrt(fan_in)).
    kw, kb = jax.random.split(key)
    bound = 1.0 / (fan_in ** 0.5)
    w = jax.random.uniform(kw, (fan_in, fan_out), jnp.float32, -bound, bound)
    b = jax.random.uniform(kb, (fan_out,), jnp.float32, -bound, bound)
    return w, b


if __name__ == "__main__":
    key = jax.random.PRNGKey(0)
    kx, k1, k2, k3 = jax.random.split(key, 4)

    # x: (batch=2, channels=4, 16, 16) -> flattened input_shape = 1024.
    B, C, H, W = 2, 4, 16, 16
    input_shape = C * H * W
    x = jax.random.normal(kx, (B, C, H, W), dtype=jnp.float32)

    w1, b1 = _init_linear(k1, input_shape, 108)
    w2, b2 = _init_linear(k2, 108, 36)
    w3, b3 = _init_linear(k3, 36, 1)

    out = medium_mlp_forward(x, w1, b1, w2, b2, w3, b3)
    out = jax.block_until_ready(out)
    assert out.shape == (B, 1), out.shape

    # Pure-JAX reference (same math as the PyTorch module).
    x2 = x.reshape(B, -1)
    r1 = jax.nn.relu(x2 @ w1 + b1)
    r2 = jax.nn.relu(r1 @ w2 + b2)
    ref = jax.nn.sigmoid(r2 @ w3 + b3)
    assert jnp.allclose(out, ref, rtol=1e-5, atol=1e-6), (out, ref)

    print("KERNEL_OK")
</pallas_src>

<mosaic_0001>
module attributes {stable_mosaic.version = 11 : i64} {
  func.func @_mlp_kernel(%arg0: i32, %arg1: memref<8x1024xf32, #tpu.memory_space<vmem>>, %arg2: memref<1024x128xf32, #tpu.memory_space<vmem>>, %arg3: memref<1x128xf32, #tpu.memory_space<vmem>>, %arg4: memref<128x128xf32, #tpu.memory_space<vmem>>, %arg5: memref<1x128xf32, #tpu.memory_space<vmem>>, %arg6: memref<1x128xf32, #tpu.memory_space<vmem>>, %arg7: memref<1x1xf32, #tpu.memory_space<smem>>, %arg8: memref<1x8xf32, #tpu.memory_space<vmem>>) attributes {dimension_semantics = [#tpu.dimension_semantics<parallel>], iteration_bounds = array<i64: 1>, scalar_prefetch = 0 : i64, scratch_operands = 0 : i64, tpu.core_type = #tpu.core_type<tc>, window_params = [{transform_indices = @transform_0, window_bounds = array<i64: 8, 1024>}, {pipeline_mode = #tpu.pipeline_mode<synchronous>, transform_indices = @transform_1, window_bounds = array<i64: 1024, 128>}, {pipeline_mode = #tpu.pipeline_mode<synchronous>, transform_indices = @transform_2, window_bounds = array<i64: 1, 128>}, {pipeline_mode = #tpu.pipeline_mode<synchronous>, transform_indices = @transform_3, window_bounds = array<i64: 128, 128>}, {pipeline_mode = #tpu.pipeline_mode<synchronous>, transform_indices = @transform_4, window_bounds = array<i64: 1, 128>}, {pipeline_mode = #tpu.pipeline_mode<synchronous>, transform_indices = @transform_5, window_bounds = array<i64: 1, 128>}, {transform_indices = @transform_6, window_bounds = array<i64: 1, 1>}, {transform_indices = @transform_7, window_bounds = array<i64: 1, 8>}]} {
    %c0 = arith.constant 0 : index
    %c0_0 = arith.constant 0 : index
    %0 = vector.load %arg1[%c0, %c0_0] : memref<8x1024xf32, #tpu.memory_space<vmem>>, vector<8x1024xf32>
    %c0_1 = arith.constant 0 : index
    %c0_2 = arith.constant 0 : index
    %1 = vector.load %arg2[%c0_1, %c0_2] : memref<1024x128xf32, #tpu.memory_space<vmem>>, vector<1024x128xf32>
    %cst = arith.constant dense<0.000000e+00> : vector<8x128xf32>
    %2 = tpu.matmul %0, %1, %cst {dimension_numbers = #tpu.dot_dimension_numbers<[1], [0], [0], [1], [0, 0, 1, 1], [], []>} : vector<8x1024xf32>, vector<1024x128xf32>, vector<8x128xf32> -> vector<8x128xf32>
    %c0_3 = arith.constant 0 : index
    %c0_4 = arith.constant 0 : index
    %3 = vector.load %arg3[%c0_3, %c0_4] : memref<1x128xf32, #tpu.memory_space<vmem>>, vector<1x128xf32>
    %4 = vector.broadcast %3 : vector<1x128xf32> to vector<8x128xf32>
    %5 = arith.addf %2, %4 : vector<8x128xf32>
    %cst_5 = arith.constant 0.000000e+00 : f32
    %6 = vector.broadcast %cst_5 : f32 to vector<8x128xf32>
    %7 = arith.maximumf %5, %6 : vector<8x128xf32>
    %c0_6 = arith.constant 0 : index
    %c0_7 = arith.constant 0 : index
    %8 = vector.load %arg4[%c0_6, %c0_7] : memref<128x128xf32, #tpu.memory_space<vmem>>, vector<128x128xf32>
    %cst_8 = arith.constant dense<0.000000e+00> : vector<8x128xf32>
    %9 = tpu.matmul %7, %8, %cst_8 {dimension_numbers = #tpu.dot_dimension_numbers<[1], [0], [0], [1], [0, 0, 1, 1], [], []>} : vector<8x128xf32>, vector<128x128xf32>, vector<8x128xf32> -> vector<8x128xf32>
    %c0_9 = arith.constant 0 : index
    %c0_10 = arith.constant 0 : index
    %10 = vector.load %arg5[%c0_9, %c0_10] : memref<1x128xf32, #tpu.memory_space<vmem>>, vector<1x128xf32>
    %11 = vector.broadcast %10 : vector<1x128xf32> to vector<8x128xf32>
    %12 = arith.addf %9, %11 : vector<8x128xf32>
    %cst_11 = arith.constant 0.000000e+00 : f32
    %13 = vector.broadcast %cst_11 : f32 to vector<8x128xf32>
    %14 = arith.maximumf %12, %13 : vector<8x128xf32>
    %c0_12 = arith.constant 0 : index
    %c0_13 = arith.constant 0 : index
    %15 = vector.load %arg6[%c0_12, %c0_13] : memref<1x128xf32, #tpu.memory_space<vmem>>, vector<1x128xf32>
    %16 = tpu.transpose %14, [1, 0] : vector<8x128xf32> -> vector<128x8xf32>
    %cst_14 = arith.constant dense<0.000000e+00> : vector<1x8xf32>
    %17 = tpu.matmul %15, %16, %cst_14 {dimension_numbers = #tpu.dot_dimension_numbers<[1], [0], [0], [1], [0, 0, 1, 1], [], []>} : vector<1x128xf32>, vector<128x8xf32>, vector<1x8xf32> -> vector<1x8xf32>
    %c0_15 = arith.constant 0 : index
    %c0_16 = arith.constant 0 : index
    %18 = memref.load %arg7[%c0_15, %c0_16] : memref<1x1xf32, #tpu.memory_space<smem>>
    %19 = vector.broadcast %18 : f32 to vector<1x8xf32>
    %20 = arith.addf %17, %19 : vector<1x8xf32>
    %21 = arith.negf %20 : vector<1x8xf32>
    %22 = math.exp %21 : vector<1x8xf32>
    %cst_17 = arith.constant 1.000000e+00 : f32
    %23 = vector.broadcast %cst_17 : f32 to vector<1x8xf32>
    %24 = arith.addf %23, %22 : vector<1x8xf32>
    %25 = arith.divf %23, %24 : vector<1x8xf32>
    %c0_18 = arith.constant 0 : index
    %c0_19 = arith.constant 0 : index
    %26 = vector.load %arg8[%c0_18, %c0_19] : memref<1x8xf32, #tpu.memory_space<vmem>>, vector<1x8xf32>
    tpu.vector_store %arg8[%c0_18, %c0_19], %25 {strides = array<i32>} : memref<1x8xf32, #tpu.memory_space<vmem>>, vector<1x8xf32>,
    return
  }
  func.func @transform_0(%arg0: i32) -> (i32, i32) {
    %c0_i32 = arith.constant 0 : i32
    %c0_i32_0 = arith.constant 0 : i32
    return %arg0, %c0_i32 : i32, i32
  }
  func.func @transform_1(%arg0: i32) -> (i32, i32) {
    %c0_i32 = arith.constant 0 : i32
    %c0_i32_0 = arith.constant 0 : i32
    %c0_i32_1 = arith.constant 0 : i32
    return %c0_i32, %c0_i32_0 : i32, i32
  }
  func.func @transform_2(%arg0: i32) -> (i32, i32) {
    %c0_i32 = arith.constant 0 : i32
    %c0_i32_0 = arith.constant 0 : i32
    %c0_i32_1 = arith.constant 0 : i32
    return %c0_i32, %c0_i32_0 : i32, i32
  }
  func.func @transform_3(%arg0: i32) -> (i32, i32) {
    %c0_i32 = arith.constant 0 : i32
    %c0_i32_0 = arith.constant 0 : i32
    %c0_i32_1 = arith.constant 0 : i32
    return %c0_i32, %c0_i32_0 : i32, i32
  }
  func.func @transform_4(%arg0: i32) -> (i32, i32) {
    %c0_i32 = arith.constant 0 : i32
    %c0_i32_0 = arith.constant 0 : i32
    %c0_i32_1 = arith.constant 0 : i32
    return %c0_i32, %c0_i32_0 : i32, i32
  }
  func.func @transform_5(%arg0: i32) -> (i32, i32) {
    %c0_i32 = arith.constant 0 : i32
    %c0_i32_0 = arith.constant 0 : i32
    %c0_i32_1 = arith.constant 0 : i32
    return %c0_i32, %c0_i32_0 : i32, i32
  }
  func.func @transform_6(%arg0: i32) -> (i32, i32) {
    %c0_i32 = arith.constant 0 : i32
    %c0_i32_0 = arith.constant 0 : i32
    %c0_i32_1 = arith.constant 0 : i32
    return %c0_i32, %c0_i32_0 : i32, i32
  }
  func.func @transform_7(%arg0: i32) -> (i32, i32) {
    %c0_i32 = arith.constant 0 : i32
    %c0_i32_0 = arith.constant 0 : i32
    return %c0_i32, %arg0 : i32, i32
  }
}

</mosaic_0001>

<bundles_post_ra>
// kernel: medium_mlp_forward.1
= control target key start
LH: loop header
LB: loop body
LE: loop exit
PB: predicated region body
PF: predicated region fallthrough
CT: control target
= control target key end

     0   :  { %vm992_vm0 = vmmov 0   ;;  %vm624_vm1 = vcmask 57344   ;;  %s1505_s1 = inlined_call_operand.vmem [shape: f32[1024,128], index: 1, kind: input, shape index: {}]   ;;  %s1506_s0 = inlined_call_operand.vmem [shape: f32[8,1024], index: 0, kind: input, shape index: {}]   ;;  %s1507_s3 = inlined_call_operand.vmem [shape: f32[128,128], index: 3, kind: input, shape index: {}]   ;;  %s1508_s2 = inlined_call_operand.vmem [shape: f32[1,128], index: 2, kind: input, shape index: {}]   ;;  %s1509_s4 = inlined_call_operand.vmem [shape: f32[1,128], index: 4, kind: input, shape index: {}]   ;;  %s1510_s5 = inlined_call_operand.vmem [shape: f32[1,128], index: 5, kind: input, shape index: {}]   ;;  %s1511_s6 = inlined_call_operand.<no memory space> [shape: f32[1,1], index: 6, kind: input, shape index: {}]   ;;  %s1512_s7 = inlined_call_operand.vmem [shape: f32[1,8], index: 7, kind: output, shape index: {}]  }
   0x1   :  { %v51_v0 = vld [vmem:[%s1505_s1 + $0x80] sm:$0xff]  ;;  %v52_v1 = vld [vmem:[%s1505_s1 + $0x88] sm:$0xff]  ;;  %v53_v11 = vld [vmem:[%s1505_s1 + $0x90] sm:$0xff] }
   0x2   :  { %v35_v2 = vld [vmem:[%s1505_s1] sm:$0xff]  ;;  %v832_v3 = vpack.c.bf16 %v52_v1, %v51_v0  ;;  %v36_v4 = vld [vmem:[%s1505_s1 + $0x8] sm:$0xff]  ;;  %v54_v13 = vld [vmem:[%s1505_s1 + $0x98] sm:$0xff] }
   0x3   :  { %v83_v5 = vld [vmem:[%s1505_s1 + $0x180] sm:$0xff]  ;;  %v84_v6 = vld [vmem:[%s1505_s1 + $0x188] sm:$0xff]  ;;  %v834_v7 = vpack.c.bf16 %v36_v4, %v35_v2  ;;  %v37_v14 = vld [vmem:[%s1505_s1 + $0x10] sm:$0xff]  ;;  %v836_v16 = vpack.c.bf16 %v54_v13, %v53_v11 }
   0x4   :  { %v864_v8 = vpack.c.bf16 %v84_v6, %v83_v5  ;;  %v67_v9 = vld [vmem:[%s1505_s1 + $0x100] sm:$0xff]  ;;  %v68_v10 = vld [vmem:[%s1505_s1 + $0x108] sm:$0xff]  ;;  %833 = vmatprep.subr.bf16.mxu0 %v832_v3  ;;  %v38_v15 = vld [vmem:[%s1505_s1 + $0x18] sm:$0xff] }
   0x5   :  { %v866_v12 = vpack.c.bf16 %v68_v10, %v67_v9  ;;  %835 = vmatpush3.bf16.msra.mxu0 %v834_v7  ;;  %v838_v17 = vpack.c.bf16 %v38_v15, %v37_v14  ;;  %v85_v18 = vld [vmem:[%s1505_s1 + $0x190] sm:$0xff]  ;;  %v86_v19 = vld [vmem:[%s1505_s1 + $0x198] sm:$0xff]  ;;  %v55_v23 = vld [vmem:[%s1505_s1 + $0xa0] sm:$0xff] }
   0x6   :  { %865 = vmatprep.subr.bf16.mxu1 %v864_v8  ;;  %v69_v20 = vld [vmem:[%s1505_s1 + $0x110] sm:$0xff]  ;;  %v868_v21 = vpack.c.bf16 %v86_v19, %v85_v18  ;;  %v70_v22 = vld [vmem:[%s1505_s1 + $0x118] sm:$0xff]  ;;  %v56_v24 = vld [vmem:[%s1505_s1 + $0xa8] sm:$0xff]  ;;  %837 = vmatprep.subr.bf16.mxu0 %v836_v16 }
   0x7   :  { %867 = vmatpush3.bf16.msra.mxu1 %v866_v12  ;;  %v870_v25 = vpack.c.bf16 %v70_v22, %v69_v20  ;;  %v840_v26 = vpack.c.bf16 %v56_v24, %v55_v23  ;;  %v39_v27 = vld [vmem:[%s1505_s1 + $0x20] sm:$0xff]  ;;  %v40_v28 = vld [vmem:[%s1505_s1 + $0x28] sm:$0xff]  ;;  %v57_v35 = vld [vmem:[%s1505_s1 + $0xb0] sm:$0xff] }
   0x8   :  { %v87_v29 = vld [vmem:[%s1505_s1 + $0x1a0] sm:$0xff]  ;;  %869 = vmatprep.subr.bf16.mxu1 %v868_v21  ;;  %v88_v30 = vld [vmem:[%s1505_s1 + $0x1a8] sm:$0xff]  ;;  %v842_v33 = vpack.c.bf16 %v40_v28, %v39_v27  ;;  %v58_v36 = vld [vmem:[%s1505_s1 + $0xb8] sm:$0xff] }
   0x9   :  { %v71_v31 = vld [vmem:[%s1505_s1 + $0x120] sm:$0xff]  ;;  %v72_v32 = vld [vmem:[%s1505_s1 + $0x128] sm:$0xff]  ;;  %839 = vmatpush3.bf16.msra.mxu0 %v838_v17  ;;  %v872_v34 = vpack.c.bf16 %v88_v30, %v87_v29  ;;  %v41_v37 = vld [vmem:[%s1505_s1 + $0x30] sm:$0xff]  ;;  %v844_v39 = vpack.c.bf16 %v58_v36, %v57_v35 }
   0xa   :  { %841 = vmatprep.subr.bf16.mxu0 %v840_v26  ;;  %v874_v38 = vpack.c.bf16 %v72_v32, %v71_v31  ;;  %v42_v40 = vld [vmem:[%s1505_s1 + $0x38] sm:$0xff]  ;;  %v89_v41 = vld [vmem:[%s1505_s1 + $0x1b0] sm:$0xff]  ;;  %v59_v46 = vld [vmem:[%s1505_s1 + $0xc0] sm:$0xff] }
   0xb   :  { %871 = vmatpush3.bf16.msra.mxu1 %v870_v25  ;;  %v90_v42 = vld [vmem:[%s1505_s1 + $0x1b8] sm:$0xff]  ;;  %v73_v44 = vld [vmem:[%s1505_s1 + $0x130] sm:$0xff]  ;;  %v60_v47 = vld [vmem:[%s1505_s1 + $0xc8] sm:$0xff]  ;;  %v846_v48 = vpack.c.bf16 %v42_v40, %v41_v37 }
   0xc   :  { %873 = vmatprep.subr.bf16.mxu1 %v872_v34  ;;  %v876_v43 = vpack.c.bf16 %v90_v42, %v89_v41  ;;  %v74_v45 = vld [vmem:[%s1505_s1 + $0x138] sm:$0xff]  ;;  %v91_v49 = vld [vmem:[%s1505_s1 + $0x1c0] sm:$0xff]  ;;  %v92_v50 = vld [vmem:[%s1505_s1 + $0x1c8] sm:$0xff]  ;;  %v848_v52 = vpack.c.bf16 %v60_v47, %v59_v46 }
   0xd   :  { %843 = vmatpush3.bf16.msra.mxu0 %v842_v33  ;;  %v878_v51 = vpack.c.bf16 %v74_v45, %v73_v44  ;;  %v43_v53 = vld [vmem:[%s1505_s1 + $0x40] sm:$0xff]  ;;  %v44_v54 = vld [vmem:[%s1505_s1 + $0x48] sm:$0xff]  ;;  %v880_v56 = vpack.c.bf16 %v92_v50, %v91_v49  ;;  %v61_v58 = vld [vmem:[%s1505_s1 + $0xd0] sm:$0xff] }
   0xe   :  { %845 = vmatprep.subr.bf16.mxu0 %v844_v39  ;;  %v75_v55 = vld [vmem:[%s1505_s1 + $0x140] sm:$0xff]  ;;  %v76_v57 = vld [vmem:[%s1505_s1 + $0x148] sm:$0xff]  ;;  %v62_v59 = vld [vmem:[%s1505_s1 + $0xd8] sm:$0xff]  ;;  %v850_v62 = vpack.c.bf16 %v44_v54, %v43_v53 }
   0xf   :  { %875 = vmatpush3.bf16.msra.mxu1 %v874_v38  ;;  %v93_v60 = vld [vmem:[%s1505_s1 + $0x1d0] sm:$0xff]  ;;  %v94_v61 = vld [vmem:[%s1505_s1 + $0x1d8] sm:$0xff]  ;;  %v882_v63 = vpack.c.bf16 %v76_v57, %v75_v55  ;;  %v852_v0 = vpack.c.bf16 %v62_v59, %v61_v58  ;;  %v63_v6 = vld [vmem:[%s1505_s1 + $0xe0] sm:$0xff] }
  0x10   :  { %877 = vmatprep.subr.bf16.mxu1 %v876_v43  ;;  %v45_v1 = vld [vmem:[%s1505_s1 + $0x50] sm:$0xff]  ;;  %v46_v2 = vld [vmem:[%s1505_s1 + $0x58] sm:$0xff]  ;;  %v884_v4 = vpack.c.bf16 %v94_v61, %v93_v60  ;;  %v64_v7 = vld [vmem:[%s1505_s1 + $0xe8] sm:$0xff] }
  0x11   :  { %847 = vmatpush3.bf16.msra.mxu0 %v846_v48  ;;  %v77_v3 = vld [vmem:[%s1505_s1 + $0x150] sm:$0xff]  ;;  %v78_v5 = vld [vmem:[%s1505_s1 + $0x158] sm:$0xff]  ;;  %v95_v8 = vld [vmem:[%s1505_s1 + $0x1e0] sm:$0xff]  ;;  %v854_v10 = vpack.c.bf16 %v46_v2, %v45_v1  ;;  %v856_v14 = vpack.c.bf16 %v64_v7, %v63_v6 }
  0x12   :  { %849 = vmatprep.subr.bf16.mxu0 %v848_v52  ;;  %v96_v9 = vld [vmem:[%s1505_s1 + $0x1e8] sm:$0xff]  ;;  %v47_v11 = vld [vmem:[%s1505_s1 + $0x60] sm:$0xff]  ;;  %v886_v13 = vpack.c.bf16 %v78_v5, %v77_v3  ;;  %v65_v19 = vld [vmem:[%s1505_s1 + $0xf0] sm:$0xff] }
  0x13   :  { %879 = vmatpush3.bf16.msra.mxu1 %v878_v51  ;;  %v48_v12 = vld [vmem:[%s1505_s1 + $0x68] sm:$0xff]  ;;  %v79_v15 = vld [vmem:[%s1505_s1 + $0x160] sm:$0xff]  ;;  %v888_v18 = vpack.c.bf16 %v96_v9, %v95_v8  ;;  %v66_v20 = vld [vmem:[%s1505_s1 + $0xf8] sm:$0xff] }
  0x14   :  { %881 = vmatprep.subr.bf16.mxu1 %v880_v56  ;;  %v80_v16 = vld [vmem:[%s1505_s1 + $0x168] sm:$0xff]  ;;  %v30_v21 = vld [vmem:[%s1506_s0 + $0x18] sm:$0xff]  ;;  %v97_v22 = vld [vmem:[%s1505_s1 + $0x1f0] sm:$0xff]  ;;  %v858_v24 = vpack.c.bf16 %v48_v12, %v47_v11  ;;  %v860_v26 = vpack.c.bf16 %v66_v20, %v65_v19 }
  0x15   :  { %851 = vmatpush3.bf16.msra.mxu0 %v850_v62  ;;  %v28_v17 = vld [vmem:[%s1506_s0 + $0x8] sm:$0xff]  ;;  %v98_v23 = vld [vmem:[%s1505_s1 + $0x1f8] sm:$0xff]  ;;  %304 = vmatprep.mubr.f32.mxu1 %v30_v21  ;;  %v890_v25 = vpack.c.bf16 %v80_v16, %v79_v15  ;;  %v49_v27 = vld [vmem:[%s1505_s1 + $0x70] sm:$0xff] }
  0x16   :  { %853 = vmatprep.subr.bf16.mxu0 %v852_v0  ;;  %234 = vmatprep.mubr.f32.mxu0 %v28_v17  ;;  %v50_v28 = vld [vmem:[%s1505_s1 + $0x78] sm:$0xff]  ;;  %v81_v29 = vld [vmem:[%s1505_s1 + $0x170] sm:$0xff]  ;;  %v892_v30 = vpack.c.bf16 %v98_v23, %v97_v22  ;;  %v115_v32 = vld [vmem:[%s1505_s1 + $0x280] sm:$0xff] }
  0x17   :  { %883 = vmatpush3.bf16.msra.mxu1 %v882_v63  ;;  %v82_v31 = vld [vmem:[%s1505_s1 + $0x178] sm:$0xff]  ;;  %v116_v33 = vld [vmem:[%s1505_s1 + $0x288] sm:$0xff]  ;;  %v147_v34 = vld [vmem:[%s1505_s1 + $0x380] sm:$0xff]  ;;  %v862_v36 = vpack.c.bf16 %v50_v28, %v49_v27 }
  0x18   :  { %885 = vmatprep.subr.bf16.mxu1 %v884_v4  ;;  %v148_v35 = vld [vmem:[%s1505_s1 + $0x388] sm:$0xff]  ;;  %v894_v37 = vpack.c.bf16 %v82_v31, %v81_v29  ;;  %v896_v38 = vpack.c.bf16 %v116_v33, %v115_v32  ;;  %v99_v39 = vld [vmem:[%s1505_s1 + $0x200] sm:$0xff]  ;;  %v117_v44 = vld [vmem:[%s1505_s1 + $0x290] sm:$0xff] }
  0x19   :  { %855 = vmatpush3.bf16.msra.mxu0 %v854_v10  ;;  %v100_v40 = vld [vmem:[%s1505_s1 + $0x208] sm:$0xff]  ;;  %v131_v41 = vld [vmem:[%s1505_s1 + $0x300] sm:$0xff]  ;;  %v928_v42 = vpack.c.bf16 %v148_v35, %v147_v34  ;;  %v118_v45 = vld [vmem:[%s1505_s1 + $0x298] sm:$0xff] }
  0x1a   :  { %857 = vmatprep.subr.bf16.mxu0 %v856_v14  ;;  %v132_v43 = vld [vmem:[%s1505_s1 + $0x308] sm:$0xff]  ;;  %v149_v46 = vld [vmem:[%s1505_s1 + $0x390] sm:$0xff]  ;;  %v150_v47 = vld [vmem:[%s1505_s1 + $0x398] sm:$0xff]  ;;  %v898_v49 = vpack.c.bf16 %v100_v40, %v99_v39  ;;  %v900_v52 = vpack.c.bf16 %v118_v45, %v117_v44 }
  0x1b   :  { %887 = vmatpush3.bf16.msra.mxu1 %v886_v13  ;;  %v27_v48 = vld [vmem:[%s1506_s0] sm:$0xff]  ;;  %v29_v50 = vld [vmem:[%s1506_s0 + $0x10] sm:$0xff]  ;;  %v930_v51 = vpack.c.bf16 %v132_v43, %v131_v41  ;;  %v102_v54 = vld [vmem:[%s1505_s1 + $0x218] sm:$0xff]  ;;  %v932_v56 = vpack.c.bf16 %v150_v47, %v149_v46 }
  0x1c   :  { %889 = vmatprep.subr.bf16.mxu1 %v888_v18  ;;  %v101_v53 = vld [vmem:[%s1505_s1 + $0x210] sm:$0xff]  ;;  %v134_v57 = vld [vmem:[%s1505_s1 + $0x318] sm:$0xff]  ;;  %v119_v58 = vld [vmem:[%s1505_s1 + $0x2a0] sm:$0xff] }
  0x1d   :  { %859 = vmatpush3.bf16.msra.mxu0 %v858_v24  ;;  %v133_v55 = vld [vmem:[%s1505_s1 + $0x310] sm:$0xff]  ;;  %v120_v59 = vld [vmem:[%s1505_s1 + $0x2a8] sm:$0xff]  ;;  %v151_v60 = vld [vmem:[%s1505_s1 + $0x3a0] sm:$0xff]  ;;  %v902_v62 = vpack.c.bf16 %v102_v54, %v101_v53 }
  0x1e   :  { %861 = vmatprep.subr.bf16.mxu0 %v860_v26  ;;  %v152_v61 = vld [vmem:[%s1505_s1 + $0x3a8] sm:$0xff]  ;;  %v934_v63 = vpack.c.bf16 %v134_v57, %v133_v55  ;;  %v904_v0 = vpack.c.bf16 %v120_v59, %v119_v58  ;;  %v103_v1 = vld [vmem:[%s1505_s1 + $0x220] sm:$0xff]  ;;  %v121_v6 = vld [vmem:[%s1505_s1 + $0x2b0] sm:$0xff] }
  0x1f   :  { %891 = vmatpush3.bf16.msra.mxu1 %v890_v25  ;;  %v104_v2 = vld [vmem:[%s1505_s1 + $0x228] sm:$0xff]  ;;  %v135_v3 = vld [vmem:[%s1505_s1 + $0x320] sm:$0xff]  ;;  %v936_v4 = vpack.c.bf16 %v152_v61, %v151_v60  ;;  %v122_v7 = vld [vmem:[%s1505_s1 + $0x2b8] sm:$0xff] }
  0x20   :  { %893 = vmatprep.subr.bf16.mxu1 %v892_v30  ;;  %v136_v5 = vld [vmem:[%s1505_s1 + $0x328] sm:$0xff]  ;;  %v153_v8 = vld [vmem:[%s1505_s1 + $0x3b0] sm:$0xff]  ;;  %v154_v9 = vld [vmem:[%s1505_s1 + $0x3b8] sm:$0xff]  ;;  %v906_v10 = vpack.c.bf16 %v104_v2, %v103_v1  ;;  %v908_v12 = vpack.c.bf16 %v122_v7, %v121_v6 }
  0x21   :  { %863 = vmatpush3.bf16.msra.mxu0 %v862_v36  ;;  %v938_v11 = vpack.c.bf16 %v136_v5, %v135_v3  ;;  %v105_v13 = vld [vmem:[%s1505_s1 + $0x230] sm:$0xff]  ;;  %v106_v14 = vld [vmem:[%s1505_s1 + $0x238] sm:$0xff]  ;;  %v940_v16 = vpack.c.bf16 %v154_v9, %v153_v8  ;;  %v123_v18 = vld [vmem:[%s1505_s1 + $0x2c0] sm:$0xff]  ;;  %v991_v8 = vmov 0.0|0.0  }
  0x22   :  { %897 = vmatprep.subr.bf16.mxu0 %v896_v38  ;;  %v137_v15 = vld [vmem:[%s1505_s1 + $0x330] sm:$0xff]  ;;  %v138_v17 = vld [vmem:[%s1505_s1 + $0x338] sm:$0xff]  ;;  %v124_v19 = vld [vmem:[%s1505_s1 + $0x2c8] sm:$0xff]  ;;  %v910_v22 = vpack.c.bf16 %v106_v14, %v105_v13 }
  0x23   :  { %895 = vmatpush3.bf16.msra.mxu1 %v894_v37  ;;  %v155_v20 = vld [vmem:[%s1505_s1 + $0x3c0] sm:$0xff]  ;;  %v156_v21 = vld [vmem:[%s1505_s1 + $0x3c8] sm:$0xff]  ;;  %v34_v24 = vld [vmem:[%s1506_s0 + $0x38] sm:$0xff]  ;;  %v942_v25 = vpack.c.bf16 %v138_v17, %v137_v15  ;;  %v912_v26 = vpack.c.bf16 %v124_v19, %v123_v18 }
  0x24   :  { %929 = vmatprep.subr.bf16.mxu1 %v928_v42  ;;  %235 = vmatmul.mubr.f32.vlgmr.msra.gmra.mrb[0].mxu0 %v27_v48  ;;  %v32_v23 = vld [vmem:[%s1506_s0 + $0x28] sm:$0xff]  ;;  %v107_v27 = vld [vmem:[%s1505_s1 + $0x240] sm:$0xff]  ;;  %v944_v30 = vpack.c.bf16 %v156_v21, %v155_v20  ;;  %v125_v32 = vld [vmem:[%s1505_s1 + $0x2d0] sm:$0xff] }
  0x25   :  { %899 = vmatpush3.bf16.msra.mxu0 %v898_v49  ;;  %v108_v28 = vld [vmem:[%s1505_s1 + $0x248] sm:$0xff]  ;;  %v139_v29 = vld [vmem:[%s1505_s1 + $0x340] sm:$0xff]  ;;  %v126_v33 = vld [vmem:[%s1505_s1 + $0x2d8] sm:$0xff]  ;;  %374 = vmatprep.mubr.f32.mxu0 %v32_v23 }
  0x26   :  { %305 = vmatmul.mubr.f32.vlgmr.msra.gmra.mrb[0].mxu1 %v29_v50  ;;  %901 = vmatprep.subr.bf16.mxu0 %v900_v52  ;;  %v140_v31 = vld [vmem:[%s1505_s1 + $0x348] sm:$0xff]  ;;  %v157_v34 = vld [vmem:[%s1505_s1 + $0x3d0] sm:$0xff]  ;;  %v158_v35 = vld [vmem:[%s1505_s1 + $0x3d8] sm:$0xff]  ;;  %v914_v36 = vpack.c.bf16 %v108_v28, %v107_v27  ;;  %v916_v38 = vpack.c.bf16 %v126_v33, %v125_v32  ;;  %v993_v33 = vmov 0.0  }
  0x27   :  { %931 = vmatpush3.bf16.msra.mxu1 %v930_v51  ;;  %444 = vmatprep.mubr.f32.mxu1 %v34_v24  ;;  %v946_v37 = vpack.c.bf16 %v140_v31, %v139_v29  ;;  %v109_v39 = vld [vmem:[%s1505_s1 + $0x250] sm:$0xff]  ;;  %v110_v40 = vld [vmem:[%s1505_s1 + $0x258] sm:$0xff]  ;;  %v948_v42 = vpack.c.bf16 %v158_v35, %v157_v34  ;;  %v127_v44 = vld [vmem:[%s1505_s1 + $0x2e0] sm:$0xff] }
  0x28   :  { %933 = vmatprep.subr.bf16.mxu1 %v932_v56  ;;  %v141_v41 = vld [vmem:[%s1505_s1 + $0x350] sm:$0xff]  ;;  %v142_v43 = vld [vmem:[%s1505_s1 + $0x358] sm:$0xff]  ;;  %v128_v45 = vld [vmem:[%s1505_s1 + $0x2e8] sm:$0xff]  ;;  %v918_v48 = vpack.c.bf16 %v110_v40, %v109_v39 }
  0x29   :  { %903 = vmatpush3.bf16.msra.mxu0 %v902_v62  ;;  %v159_v46 = vld [vmem:[%s1505_s1 + $0x3e0] sm:$0xff]  ;;  %v160_v47 = vld [vmem:[%s1505_s1 + $0x3e8] sm:$0xff]  ;;  %v950_v49 = vpack.c.bf16 %v142_v43, %v141_v41  ;;  %v920_v50 = vpack.c.bf16 %v128_v45, %v127_v44  ;;  %v129_v56 = vld [vmem:[%s1505_s1 + $0x2f0] sm:$0xff] }
  0x2a   :  { %905 = vmatprep.subr.bf16.mxu0 %v904_v0  ;;  %v111_v51 = vld [vmem:[%s1505_s1 + $0x260] sm:$0xff]  ;;  %v112_v52 = vld [vmem:[%s1505_s1 + $0x268] sm:$0xff]  ;;  %v952_v54 = vpack.c.bf16 %v160_v47, %v159_v46  ;;  %v130_v57 = vld [vmem:[%s1505_s1 + $0x2f8] sm:$0xff] }
  0x2b   :  { %935 = vmatpush3.bf16.msra.mxu1 %v934_v63  ;;  %v143_v53 = vld [vmem:[%s1505_s1 + $0x360] sm:$0xff]  ;;  %v144_v55 = vld [vmem:[%s1505_s1 + $0x368] sm:$0xff]  ;;  %v161_v58 = vld [vmem:[%s1505_s1 + $0x3f0] sm:$0xff]  ;;  %v922_v60 = vpack.c.bf16 %v112_v52, %v111_v51  ;;  %v924_v62 = vpack.c.bf16 %v130_v57, %v129_v56 }
  0x2c   :  { %937 = vmatprep.subr.bf16.mxu1 %v936_v4  ;;  %v162_v59 = vld [vmem:[%s1505_s1 + $0x3f8] sm:$0xff]  ;;  %v954_v61 = vpack.c.bf16 %v144_v55, %v143_v53  ;;  %v113_v63 = vld [vmem:[%s1505_s1 + $0x270] sm:$0xff]  ;;  %v31_v6 = vld [vmem:[%s1506_s0 + $0x20] sm:$0xff] }
  0x2d   :  { %907 = vmatpush3.bf16.msra.mxu0 %v906_v10  ;;  %v114_v0 = vld [vmem:[%s1505_s1 + $0x278] sm:$0xff]  ;;  %v956_v1 = vpack.c.bf16 %v162_v59, %v161_v58  ;;  %v145_v2 = vld [vmem:[%s1505_s1 + $0x370] sm:$0xff]  ;;  %v451_v9 = vld [vmem:[%s1507_s3] sm:$0xff]  ;;  %v547_v58 = vstv %s1511_s6 }
  0x2e   :  { %909 = vmatprep.subr.bf16.mxu0 %v908_v12  ;;  %v146_v3 = vld [vmem:[%s1505_s1 + $0x378] sm:$0xff]  ;;  %v926_v4 = vpack.c.bf16 %v114_v0, %v113_v63  ;;  %v33_v7 = vld [vmem:[%s1506_s0 + $0x30] sm:$0xff]  ;;  %v452_v10 = vld [vmem:[%s1507_s3 + $0x8] sm:$0xff] }
  0x2f   :  { %939 = vmatpush3.bf16.msra.mxu1 %v938_v11  ;;  %v958_v5 = vpack.c.bf16 %v146_v3, %v145_v2  ;;  %v453_v11 = vld [vmem:[%s1507_s3 + $0x10] sm:$0xff]  ;;  %v961_v12 = vpack.c.bf16 %v452_v10, %v451_v9  ;;  %v454_v13 = vld [vmem:[%s1507_s3 + $0x18] sm:$0xff]  ;;  %v455_v15 = vld [vmem:[%s1507_s3 + $0x20] sm:$0xff] }
  0x30   :  { %941 = vmatprep.subr.bf16.mxu1 %v940_v16  ;;  %v964_v14 = vpack.c.bf16 %v454_v13, %v453_v11  ;;  %v456_v16 = vld [vmem:[%s1507_s3 + $0x28] sm:$0xff]  ;;  %v457_v18 = vld [vmem:[%s1507_s3 + $0x30] sm:$0xff]  ;;  %v458_v19 = vld [vmem:[%s1507_s3 + $0x38] sm:$0xff] }
  0x31   :  { %911 = vmatpush3.bf16.msra.mxu0 %v910_v22  ;;  %v967_v17 = vpack.c.bf16 %v456_v16, %v455_v15  ;;  %v970_v20 = vpack.c.bf16 %v458_v19, %v457_v18  ;;  %v459_v21 = vld [vmem:[%s1507_s3 + $0x40] sm:$0xff]  ;;  %v460_v22 = vld [vmem:[%s1507_s3 + $0x48] sm:$0xff]  ;;  %v461_v24 = vld [vmem:[%s1507_s3 + $0x50] sm:$0xff] }
  0x32   :  { %913 = vmatprep.subr.bf16.mxu0 %v912_v26  ;;  %v973_v23 = vpack.c.bf16 %v460_v22, %v459_v21  ;;  %v463_v27 = vld [vmem:[%s1507_s3 + $0x60] sm:$0xff]  ;;  %v464_v28 = vld [vmem:[%s1507_s3 + $0x68] sm:$0xff]  ;;  %v466_v31 = vld [vmem:[%s1507_s3 + $0x78] sm:$0xff] }
  0x33   :  { %943 = vmatpush3.bf16.msra.mxu1 %v942_v25  ;;  %v462_v25 = vld [vmem:[%s1507_s3 + $0x58] sm:$0xff]  ;;  %v979_v29 = vpack.c.bf16 %v464_v28, %v463_v27  ;;  %v630_v35 = vld [vmem:[%s1508_s2] ss:$0 sm:$0xff] }
  0x34   :  { %945 = vmatprep.subr.bf16.mxu1 %v944_v30  ;;  %v976_v26 = vpack.c.bf16 %v462_v25, %v461_v24  ;;  %v465_v30 = vld [vmem:[%s1507_s3 + $0x70] sm:$0xff]  ;;  %v631_v52 = vld [vmem:[%s1509_s4] ss:$0 sm:$0xff] }
  0x35   :  { %915 = vmatpush3.bf16.msra.mxu0 %v914_v36  ;;  %v982_v32 = vpack.c.bf16 %v466_v31, %v465_v30  ;;  %v545_v57 = vld [vmem:[%s1510_s5] sm:$0x1] }
  0x36   :  { %917 = vmatprep.subr.bf16.mxu0 %v916_v38 }
  0x37   :  { %947 = vmatpush3.bf16.msra.mxu1 %v946_v37 }
  0x38   :  { %949 = vmatprep.subr.bf16.mxu1 %v948_v42 }
  0x39   :  { %919 = vmatpush3.bf16.msra.mxu0 %v918_v48 }
  0x3a   :  { %921 = vmatprep.subr.bf16.mxu0 %v920_v50 }
  0x3b   :  { %951 = vmatpush3.bf16.msra.mxu1 %v950_v49 }
  0x3c   :  { %953 = vmatprep.subr.bf16.mxu1 %v952_v54 }
  0x3d   :  { %923 = vmatpush3.bf16.msra.mxu0 %v922_v60 }
  0x3e   :  { %925 = vmatprep.subr.bf16.mxu0 %v924_v62 }
  0x3f   :  { %955 = vmatpush3.bf16.msra.mxu1 %v954_v61 }
  0x40   :  { %957 = vmatprep.subr.bf16.mxu1 %v956_v1 }
  0x41   :  { %927 = vmatpush3.bf16.msra.mxu0 %v926_v4 }
  0x42   :  { %960 = vmatprep.subr.bf16.mxu0 %v991_v8 }
  0x43   :  { %959 = vmatpush3.bf16.msra.mxu1 %v958_v5 }
  0x44   :  { %375 = vmatmul.mubr.f32.vlgmr.msra.gmra.mrb[2].mxu0 %v31_v6  ;;  %827 = vmatprep.subr.mxu1 %v993_v33 }
  0x45   :  { %962 = vmatpush3.bf16.msra.mxu0 %v961_v12  ;;  %824 = vmatprep.mubr.msk.f32.mxu0 %vm992_vm0, %v993_v33 }
  0x46   :  { %445 = vmatmul.mubr.f32.vlgmr.msra.gmra.mrb[2].mxu1 %v33_v7  ;;  %963 = vmatprep.subr.bf16.mxu0 %v991_v8 }
  0x47   :  { %829 = vmatprep.mubr.msk.f32.mxu1 %vm992_vm0, %v993_v33 }
  0x49   :  { %965 = vmatpush3.bf16.msra.mxu0 %v964_v14 }
  0x4a   :  { %966 = vmatprep.subr.bf16.mxu0 %v991_v8 }
  0x4d   :  { %968 = vmatpush3.bf16.msra.mxu0 %v967_v17 }
  0x4e   :  { %969 = vmatprep.subr.bf16.mxu0 %v991_v8 }
  0x51   :  { %971 = vmatpush3.bf16.msra.mxu0 %v970_v20 }
  0x52   :  { %972 = vmatprep.subr.bf16.mxu0 %v991_v8 }
  0x55   :  { %974 = vmatpush3.bf16.msra.mxu0 %v973_v23 }
  0x56   :  { %975 = vmatprep.subr.bf16.mxu0 %v991_v8 }
  0x59   :  { %977 = vmatpush3.bf16.msra.mxu0 %v976_v26 }
  0x5a   :  { %978 = vmatprep.subr.bf16.mxu0 %v991_v8 }
  0x5d   :  { %980 = vmatpush3.bf16.msra.mxu0 %v979_v29 }
  0x5e   :  { %981 = vmatprep.subr.bf16.mxu0 %v991_v8 }
  0x61   :  { %983 = vmatpush3.bf16.msra.mxu0 %v982_v32 }
  0xf7   :  { %v665_v34 = vpop.f32.mrb[0].mxu0 }
  0xf8   :  { %v666_v36 = vpop.f32.mrb[1].mxu0 }
  0xf9   :  { %v700_v37 = vpop.f32.mrb[0].mxu1  ;;  %v667_v38 = vadd.f32 %v666_v36, %v665_v34 }
  0xfa   :  { %v701_v39 = vpop.f32.mrb[1].mxu1 }
  0xfb   :  { %v702_v40 = vadd.f32 %v701_v39, %v700_v37  ;;  %v237_v41 = vadd.f32 %v667_v38, %v630_v35 }
  0xfd   :  { %v307_v42 = vadd.f32 %v702_v40, %v237_v41 }
 0x117   :  { %v735_v43 = vpop.f32.mrb[2].mxu0 }
 0x118   :  { %v736_v44 = vpop.f32.mrb[3].mxu0 }
 0x119   :  { %v770_v45 = vpop.f32.mrb[2].mxu1  ;;  %v737_v46 = vadd.f32 %v736_v44, %v735_v43 }
 0x11a   :  { %v771_v47 = vpop.f32.mrb[3].mxu1 }
 0x11b   :  { %v772_v48 = vadd.f32 %v771_v47, %v770_v45  ;;  %v377_v49 = vadd.f32 %v737_v46, %v307_v42 }
 0x11d   :  { %v447_v50 = vadd.f32 %v772_v48, %v377_v49 }
 0x11f   :  { %v450_v51 = vmax.f32 %v447_v50, 0.0 }
 0x121   :  { %825 = vmatmul.mubr.f32.vlgmr.msra.gmra.mrb[4].mxu0 %v450_v51 }
 0x1f4   :  { %v540_v53 = vpop.f32.mrb[4].mxu0 }
 0x1f5   :  { %v541_v54 = vadd.f32 %v631_v52, %v540_v53  ;;  %v826_v55 = vpop.f32.mrb[5].mxu0 }
 0x1f7   :  { %v544_v56 = vmax.f32 %v541_v54, 0.0 }
 0x1f9   :  { %828 = vmatpush3.xpose.msra.mxu1 %v544_v56 }
 0x1fc   :  { %830 = vmatmul.mubr.f32.vlgmr.msra.gmra.mrb[4].mxu1 %v545_v57 }
 0x2cf   :  { %v614_v59 = vpop.f32.mrb[4].mxu1 }
 0x2d0   :  { %v615_v60 = vadd.f32 %v614_v59, %v547_v58  ;;  %v831_v61 = vpop.f32.mrb[5].mxu1 }
 0x2d2   :  { %v632_v62 = vmul.f32 -1.442695, %v615_v60 }
 0x2d4   :  { %987 = vpow2.f32 %v632_v62 }
 0x2de   :  { %v988_v63 = vpop.eup %987 }
 0x2df   :  { %v621_v0 = vadd.f32 1.0, %v988_v63 }
 0x2e1   :  { %989 = vrcp.f32 %v621_v0 }
 0x2eb   :  { %v990_v1 = vpop.eup %989 }
 0x2ec   :  { %625 = vst.msk [vmem:[%s1512_s7] sm:$0x1] %vm624_vm1, %v990_v1 }

</bundles_post_ra>
